<compile_context>
chip_gen: v6e
topology: v6e:2x2x1
jax: 0.10.0
libtpu: 0.0.40
codegen_flags: <defaults>
</compile_context>

<pallas_src>
from functools import partial

import jax
import jax.numpy as jnp
from jax.experimental import pallas as pl
from jax.experimental.pallas import tpu as pltpu


def _choir_loss_kernel(bps_ref, anc_ref, oh_ref, tgt_ref, out_ref,
                       *, true_b, bt, needs_mask):
    """Per grid step (p outer, b inner):
       bps_ref : (3, bt, Pt) f32  per-batch BPS   OR (3, 1, Pt) shared BPS
       anc_ref : (3, bt, 32) f32  anchors (coords leading, anchor id on lanes)
       oh_ref  : (32, Pt)    f32  one-hot anchor-selection matrix (resident)
       tgt_ref : (bt, Pt)    f32  choir[..., -1] target distances
       out_ref : (1, 1, Pt)  f32  partial sum of squared errors (lane-dense)
    """
    oh = oh_ref[...]                                                   # (32, Pt)
    # In-kernel anchor gather: tiny K=32 matmul per coordinate on the idle MXU.
    sx = jnp.dot(anc_ref[0], oh, preferred_element_type=jnp.float32)   # (bt, Pt)
    sy = jnp.dot(anc_ref[1], oh, preferred_element_type=jnp.float32)
    sz = jnp.dot(anc_ref[2], oh, preferred_element_type=jnp.float32)

    dx = bps_ref[0] - sx          # (1,Pt) broadcasts to (bt,Pt) for shared BPS
    dy = bps_ref[1] - sy
    dz = bps_ref[2] - sz
    dist = jnp.sqrt(dx * dx + dy * dy + dz * dz)                       # VPU + EUP
    err = dist - tgt_ref[...]
    se = err * err

    if needs_mask:
        # Ragged last batch block: zero sublanes beyond the true batch size.
        # (jnp.where, not multiply, so garbage/NaN in padded rows cannot leak.)
        valid = true_b - pl.program_id(1) * bt
        rows = jax.lax.broadcasted_iota(jnp.int32, se.shape, 0)
        se = jnp.where(rows < valid, se, 0.0)

    out_ref[...] = jnp.sum(se, axis=0)[None, None, :]                  # XLU reduce


def _choose_tiles(B, P, batch_tile, p_tile):
    """Pick (bt, pt). pt divides P (multiple of 128 unless it is the full P);
    bt is a multiple of 8 unless it covers the whole batch. Steps are sized to
    ~512K points (~6-8 MB of input) so they are neither overhead- nor
    VMEM-bound on any generation (v5e/v6e/v7x)."""
    if p_tile is not None:
        assert P % p_tile == 0 and (p_tile % 128 == 0 or p_tile == P)
        pt = p_tile
    elif P % 128 == 0 and P > 2048:
        pt = next(c for c in (2048, 1024, 512, 256, 128) if P % c == 0)
    else:
        pt = P

    if batch_tile is not None:
        bt = min(batch_tile, B)
    else:
        bt = max(1, (512 * 1024) // pt)
    if bt >= B:
        bt = B
    else:
        bt = max(8, (bt // 8) * 8)
        if bt >= B:
            bt = B
    return bt, pt


def choir_fitting_loss(anchors, choir, bps, anchor_indices, *,
                       batch_tile=None, p_tile=None):
    """JAX/Pallas equivalent of CHOIRFittingLoss.forward.

    anchors:        (B, 32, 3) f32
    choir:          (B, P, C)  f32   (last channel is the anchor-distance target)
    bps:            (B, P, 3) or (P, 3) f32
    anchor_indices: (P,) int
    returns: scalar f32 loss
    """
    B = anchors.shape[0]
    A = anchors.shape[1]                       # 32 MANO anchors
    if bps.ndim == 2:
        assert bps.shape[0] % 32 == 0, "bps_dim must be a multiple of 32"
        assert bps.shape[0] == choir.shape[1]
        shared_bps = True
        P = bps.shape[0]
    elif bps.ndim == 3:
        assert bps.shape[1] % 32 == 0, "bps_dim must be a multiple of 32"
        assert bps.shape[1] == choir.shape[1]
        assert bps.shape[0] == anchors.shape[0]
        shared_bps = False
        P = bps.shape[1]
    else:
        raise ValueError("CHOIRFittingLoss(): BPS must be (B, P, 3) or (P, 3)")

    idx = anchor_indices.astype(jnp.int32).reshape(-1)                         # (P,)

    # One-hot anchor-selection matrix (32, P); resident in VMEM per P-tile.
    onehot = (idx[None, :] == jnp.arange(A, dtype=jnp.int32)[:, None]
              ).astype(jnp.float32)                                            # (32, P)

    # Lane-dense layouts: P on the lane axis, the tiny coord axis leading.
    if shared_bps:
        bps_t = jnp.transpose(bps.astype(jnp.float32), (1, 0))[:, None, :]     # (3, 1, P)
    else:
        bps_t = jnp.transpose(bps.astype(jnp.float32), (2, 0, 1))              # (3, B, P)
    anchors_t = jnp.transpose(anchors.astype(jnp.float32), (2, 0, 1))          # (3, B, 32)
    target = choir[..., -1].astype(jnp.float32)                                # (B, P)

    bt, pt = _choose_tiles(B, P, batch_tile, p_tile)
    gp = P // pt
    gb = pl.cdiv(B, bt)
    needs_mask = (B % bt) != 0

    kernel = partial(_choir_loss_kernel, true_b=B, bt=bt, needs_mask=needs_mask)

    if shared_bps:
        # Single slab, block depends only on the P-tile -> fetched once per
        # P-tile and kept resident across the inner batch axis.
        bps_spec = pl.BlockSpec((3, 1, pt), lambda p, b: (0, 0, p))
    else:
        bps_spec = pl.BlockSpec((3, bt, pt), lambda p, b: (0, b, p))

    partials = pl.pallas_call(
        kernel,
        out_shape=jax.ShapeDtypeStruct((gp * gb, 1, pt), jnp.float32),
        grid_spec=pltpu.PrefetchScalarGridSpec(
            num_scalar_prefetch=0,
            grid=(gp, gb),                                   # P outer, batch inner
            in_specs=[
                bps_spec,                                                  # bps
                pl.BlockSpec((3, bt, A), lambda p, b: (0, b, 0)),          # anchors
                pl.BlockSpec((A, pt), lambda p, b: (0, p)),                # one-hot
                pl.BlockSpec((bt, pt), lambda p, b: (b, p)),               # target
            ],
            out_specs=pl.BlockSpec((1, 1, pt), lambda p, b: (p * gb + b, 0, 0)),
        ),
        compiler_params=pltpu.CompilerParams(
            dimension_semantics=("parallel", "parallel"),    # megacore-friendly
            vmem_limit_bytes=32 * 1024 * 1024,               # safe on v5e/v6e/v7x
        ),
    )(bps_t, anchors_t, onehot, target)

    return jnp.sum(partials) / float(B * P)


def _reference_loss(anchors, choir, bps, anchor_indices):
    """Pure-JAX reference matching the PyTorch module."""
    B = anchors.shape[0]
    if bps.ndim == 2:
        bps = jnp.broadcast_to(bps[None], (B,) + bps.shape)
    d = jnp.sqrt(
        jnp.sum((bps[:, :, None, :] - anchors[:, None, :, :]) ** 2, axis=-1)
    )  # (B, P, 32)
    idx = anchor_indices.astype(jnp.int32)
    ids = jnp.broadcast_to(idx[None, :, None], (B, d.shape[1], 1))
    sel = jnp.take_along_axis(d, ids, axis=2)[..., 0]                  # (B, P)
    return jnp.mean((sel - choir[..., -1]) ** 2)


if __name__ == "__main__":
    key = jax.random.PRNGKey(0)
    k1, k2, k3, k4 = jax.random.split(key, 4)
    A = 32

    # Config 1: small batch, lane-aligned P, per-batch (B, P, 3) BPS.
    B, P = 2, 128
    anchors = jax.random.normal(k1, (B, A, 3), dtype=jnp.float32)
    bps = jax.random.normal(k2, (B, P, 3), dtype=jnp.float32)
    choir = jax.random.normal(k3, (B, P, 2), dtype=jnp.float32)
    anchor_indices = jax.random.randint(k4, (P,), 0, A, dtype=jnp.int32)

    loss = jax.block_until_ready(choir_fitting_loss(anchors, choir, bps, anchor_indices))
    ref = _reference_loss(anchors, choir, bps, anchor_indices)
    assert loss.shape == () and bool(jnp.isfinite(loss))
    assert jnp.allclose(loss, ref, rtol=1e-5, atol=1e-5)

    # Config 2: shared (P,3) BPS kept resident (no B-fold broadcast), non-128 P,
    # ragged batch tiling handled by in-kernel masking (no jnp.pad).
    B2, P2 = 12, 160
    anchors2 = jax.random.normal(k1, (B2, A, 3), dtype=jnp.float32)
    bps2 = jax.random.normal(k2, (P2, 3), dtype=jnp.float32)
    choir2 = jax.random.normal(k3, (B2, P2, 2), dtype=jnp.float32)
    idx2 = jax.random.randint(k4, (P2,), 0, A, dtype=jnp.int32)

    loss2 = jax.block_until_ready(
        choir_fitting_loss(anchors2, choir2, bps2, idx2, batch_tile=8))
    ref2 = _reference_loss(anchors2, choir2, bps2, idx2)
    assert bool(jnp.isfinite(loss2))
    assert jnp.allclose(loss2, ref2, rtol=1e-5, atol=1e-5)

    # Config 3: P tiled along lanes (two "parallel" P steps), shared BPS, C=4.
    B3, P3 = 3, 256
    anchors3 = jax.random.normal(k1, (B3, A, 3), dtype=jnp.float32)
    bps3 = jax.random.normal(k2, (P3, 3), dtype=jnp.float32)
    choir3 = jax.random.normal(k3, (B3, P3, 4), dtype=jnp.float32)
    idx3 = jax.random.randint(k4, (P3,), 0, A, dtype=jnp.int32)

    loss3 = jax.block_until_ready(
        choir_fitting_loss(anchors3, choir3, bps3, idx3, p_tile=128))
    ref3 = _reference_loss(anchors3, choir3, bps3, idx3)
    assert bool(jnp.isfinite(loss3))
    assert jnp.allclose(loss3, ref3, rtol=1e-5, atol=1e-5)

    print("KERNEL_OK")
</pallas_src>

<mosaic_0001>
module attributes {stable_mosaic.version = 11 : i64} {
  func.func @_choir_loss_kernel(%arg0: i32, %arg1: i32, %arg2: memref<3x2x128xf32, #tpu.memory_space<vmem>>, %arg3: memref<3x2x32xf32, #tpu.memory_space<vmem>>, %arg4: memref<32x128xf32, #tpu.memory_space<vmem>>, %arg5: memref<2x128xf32, #tpu.memory_space<vmem>>, %arg6: memref<1x1x128xf32, #tpu.memory_space<vmem>>) attributes {dimension_semantics = [#tpu.dimension_semantics<parallel>, #tpu.dimension_semantics<parallel>], iteration_bounds = array<i64: 1, 1>, scalar_prefetch = 0 : i64, scratch_operands = 0 : i64, tpu.core_type = #tpu.core_type<tc>, window_params = [{transform_indices = @transform_0, window_bounds = array<i64: 3, 2, 128>}, {transform_indices = @transform_1, window_bounds = array<i64: 3, 2, 32>}, {transform_indices = @transform_2, window_bounds = array<i64: 32, 128>}, {transform_indices = @transform_3, window_bounds = array<i64: 2, 128>}, {transform_indices = @transform_4, window_bounds = array<i64: 1, 1, 128>}]} {
    %c0 = arith.constant 0 : index
    %c0_0 = arith.constant 0 : index
    %0 = vector.load %arg4[%c0, %c0_0] : memref<32x128xf32, #tpu.memory_space<vmem>>, vector<32x128xf32>
    %c0_1 = arith.constant 0 : index
    %c0_2 = arith.constant 0 : index
    %c0_3 = arith.constant 0 : index
    %1 = vector.load %arg3[%c0_1, %c0_2, %c0_3] : memref<3x2x32xf32, #tpu.memory_space<vmem>>, vector<1x2x32xf32>
    %2 = vector.shape_cast %1 : vector<1x2x32xf32> to vector<2x32xf32>
    %cst = arith.constant dense<0.000000e+00> : vector<2x128xf32>
    %3 = tpu.matmul %2, %0, %cst {dimension_numbers = #tpu.dot_dimension_numbers<[1], [0], [0], [1], [0, 0, 1, 1], [], []>} : vector<2x32xf32>, vector<32x128xf32>, vector<2x128xf32> -> vector<2x128xf32>
    %c1 = arith.constant 1 : index
    %c0_4 = arith.constant 0 : index
    %c0_5 = arith.constant 0 : index
    %4 = vector.load %arg3[%c1, %c0_4, %c0_5] : memref<3x2x32xf32, #tpu.memory_space<vmem>>, vector<1x2x32xf32>
    %5 = vector.shape_cast %4 : vector<1x2x32xf32> to vector<2x32xf32>
    %cst_6 = arith.constant dense<0.000000e+00> : vector<2x128xf32>
    %6 = tpu.matmul %5, %0, %cst_6 {dimension_numbers = #tpu.dot_dimension_numbers<[1], [0], [0], [1], [0, 0, 1, 1], [], []>} : vector<2x32xf32>, vector<32x128xf32>, vector<2x128xf32> -> vector<2x128xf32>
    %c2 = arith.constant 2 : index
    %c0_7 = arith.constant 0 : index
    %c0_8 = arith.constant 0 : index
    %7 = vector.load %arg3[%c2, %c0_7, %c0_8] : memref<3x2x32xf32, #tpu.memory_space<vmem>>, vector<1x2x32xf32>
    %8 = vector.shape_cast %7 : vector<1x2x32xf32> to vector<2x32xf32>
    %cst_9 = arith.constant dense<0.000000e+00> : vector<2x128xf32>
    %9 = tpu.matmul %8, %0, %cst_9 {dimension_numbers = #tpu.dot_dimension_numbers<[1], [0], [0], [1], [0, 0, 1, 1], [], []>} : vector<2x32xf32>, vector<32x128xf32>, vector<2x128xf32> -> vector<2x128xf32>
    %c0_10 = arith.constant 0 : index
    %c0_11 = arith.constant 0 : index
    %c0_12 = arith.constant 0 : index
    %10 = vector.load %arg2[%c0_10, %c0_11, %c0_12] : memref<3x2x128xf32, #tpu.memory_space<vmem>>, vector<1x2x128xf32>
    %11 = vector.shape_cast %10 : vector<1x2x128xf32> to vector<2x128xf32>
    %12 = arith.subf %11, %3 : vector<2x128xf32>
    %c1_13 = arith.constant 1 : index
    %c0_14 = arith.constant 0 : index
    %c0_15 = arith.constant 0 : index
    %13 = vector.load %arg2[%c1_13, %c0_14, %c0_15] : memref<3x2x128xf32, #tpu.memory_space<vmem>>, vector<1x2x128xf32>
    %14 = vector.shape_cast %13 : vector<1x2x128xf32> to vector<2x128xf32>
    %15 = arith.subf %14, %6 : vector<2x128xf32>
    %c2_16 = arith.constant 2 : index
    %c0_17 = arith.constant 0 : index
    %c0_18 = arith.constant 0 : index
    %16 = vector.load %arg2[%c2_16, %c0_17, %c0_18] : memref<3x2x128xf32, #tpu.memory_space<vmem>>, vector<1x2x128xf32>
    %17 = vector.shape_cast %16 : vector<1x2x128xf32> to vector<2x128xf32>
    %18 = arith.subf %17, %9 : vector<2x128xf32>
    %19 = arith.mulf %12, %12 : vector<2x128xf32>
    %20 = arith.mulf %15, %15 : vector<2x128xf32>
    %21 = arith.addf %19, %20 : vector<2x128xf32>
    %22 = arith.mulf %18, %18 : vector<2x128xf32>
    %23 = arith.addf %21, %22 : vector<2x128xf32>
    %24 = math.sqrt %23 : vector<2x128xf32>
    %c0_19 = arith.constant 0 : index
    %c0_20 = arith.constant 0 : index
    %25 = vector.load %arg5[%c0_19, %c0_20] : memref<2x128xf32, #tpu.memory_space<vmem>>, vector<2x128xf32>
    %26 = arith.subf %24, %25 : vector<2x128xf32>
    %27 = arith.mulf %26, %26 : vector<2x128xf32>
    %cst_21 = arith.constant dense<0.000000e+00> : vector<128xf32>
    %28 = vector.multi_reduction <add>, %27, %cst_21 [0] : vector<2x128xf32> to vector<128xf32>
    %29 = vector.shape_cast %28 : vector<128xf32> to vector<1x1x128xf32>
    %c0_22 = arith.constant 0 : index
    %c0_23 = arith.constant 0 : index
    %c0_24 = arith.constant 0 : index
    %30 = vector.load %arg6[%c0_22, %c0_23, %c0_24] : memref<1x1x128xf32, #tpu.memory_space<vmem>>, vector<1x1x128xf32>
    tpu.vector_store %arg6[%c0_22, %c0_23, %c0_24], %29 {strides = array<i32>} : memref<1x1x128xf32, #tpu.memory_space<vmem>>, vector<1x1x128xf32>,
    return
  }
  func.func @transform_0(%arg0: i32, %arg1: i32) -> (i32, i32, i32) {
    %c0_i32 = arith.constant 0 : i32
    %c0_i32_0 = arith.constant 0 : i32
    return %c0_i32, %arg1, %arg0 : i32, i32, i32
  }
  func.func @transform_1(%arg0: i32, %arg1: i32) -> (i32, i32, i32) {
    %c0_i32 = arith.constant 0 : i32
    %c0_i32_0 = arith.constant 0 : i32
    %c0_i32_1 = arith.constant 0 : i32
    return %c0_i32, %arg1, %c0_i32_0 : i32, i32, i32
  }
  func.func @transform_2(%arg0: i32, %arg1: i32) -> (i32, i32) {
    %c0_i32 = arith.constant 0 : i32
    %c0_i32_0 = arith.constant 0 : i32
    return %c0_i32, %arg0 : i32, i32
  }
  func.func @transform_3(%arg0: i32, %arg1: i32) -> (i32, i32) {
    %c0_i32 = arith.constant 0 : i32
    return %arg1, %arg0 : i32, i32
  }
  func.func @transform_4(%arg0: i32, %arg1: i32) -> (i32, i32, i32) {
    %c1_i32 = arith.constant 1 : i32
    %0 = arith.muli %arg0, %c1_i32 : i32
    %1 = arith.addi %0, %arg1 : i32
    %c0_i32 = arith.constant 0 : i32
    %c0_i32_0 = arith.constant 0 : i32
    %c0_i32_1 = arith.constant 0 : i32
    return %1, %c0_i32, %c0_i32_0 : i32, i32, i32
  }
}

</mosaic_0001>

<bundles_post_ra>
// kernel: tpu_custom_call.1
= control target key start
LH: loop header
LB: loop body
LE: loop exit
PB: predicated region body
PF: predicated region fallthrough
CT: control target
= control target key end

     0   :  { %9 = vsyncpa [#allocation3], 0  ;;  %s545_s0 = inlined_call_operand.hbm [shape: f32[3,2,128], index: 0, kind: input, shape index: {}]   ;;  %s546_s1 = inlined_call_operand.hbm [shape: f32[3,2,32], index: 1, kind: input, shape index: {}]   ;;  %s547_s2 = inlined_call_operand.hbm [shape: f32[32,128], index: 2, kind: input, shape index: {}]   ;;  %s548_s3 = inlined_call_operand.vmem [shape: f32[2,128], index: 3, kind: input, shape index: {}]   ;;  %s549_s4 = inlined_call_operand.hbm [shape: f32[1,1,128], index: 4, kind: output, shape index: {}]  }
   0x1   :  { %10 = vsyncpa [#allocation6], 0 }
   0x2   :  { %11 = vsyncpa [#allocation4], 0  ;;  %s489_s15 = smov [#allocation5]   ;;  %s490_s17 = smov [#allocation2]  }
   0x3   :  { %s29_s16 = sshll.u32 %s489_s15, 4  ;;  %s17_s18 = sshll.u32 %s490_s17, 4  ;;  %s30_s16 = int_to_ptr.vmem [resolvable:$true] %s29_s16  ;;  %s18_s18 = int_to_ptr.vmem [resolvable:$true] %s17_s18 }
   0x4   :  { %s411_s19 = scalar_lea.vmem %s30_s16, 96  ;;  %p416_p1 = scmp.lt.s32.totalorder %s30_s16, %s30_s16 }
   0x5   :  { %p412_p0 = scmp.ne.s32.totalorder %s30_s16, %s411_s19  ;;  %p417_p2 = scmp.lt.s32.totalorder %s411_s19, %s411_s19 }
   0x7   :  { %p418_p3 = por %p417_p2, %p416_p1 }
   0x9   :  { %p419_p4 = pnand %p418_p3, %p412_p0 }
   0xb   :  { %422 = shalt.err (!%p419_p4)
}
   0xc   :  { %s491_s20 = smov 32   ;;  %s492_s21 = smov 2  }
   0xd   :  { %35 = dma.hbm_to_vmem [thread:$0]  %s546_s1, 96, %s30_s16, [#allocation6], %s491_s20, %s491_s20, %s492_s21  }
   0xe   :  { %s431_s24 = scalar_lea.vmem %s18_s18, 96  ;;  %p436_p6 = scmp.lt.s32.totalorder %s18_s18, %s18_s18 }
   0xf   :  { %p432_p5 = scmp.ne.s32.totalorder %s18_s18, %s431_s24  ;;  %p437_p7 = scmp.lt.s32.totalorder %s431_s24, %s431_s24 }
  0x11   :  { %p438_p8 = por %p437_p7, %p436_p6 }
  0x13   :  { %p439_p9 = pnand %p438_p8, %p432_p5 }
  0x15   :  { %442 = shalt.err (!%p439_p9)
}
  0x16   :  { %23 = dma.hbm_to_vmem [thread:$0]  %s545_s0, 96, %s18_s18, [#allocation3], %s491_s20, %s491_s20, %s492_s21  }
  0x17   :  { %s493_s27 = smov [#allocation7]  }
  0x18   :  { %s41_s28 = sshll.u32 %s493_s27, 4  ;;  %s42_s28 = int_to_ptr.vmem [resolvable:$true] %s41_s28 }
  0x19   :  { %s451_s29 = scalar_lea.vmem %s42_s28, 512  ;;  %p456_p11 = scmp.lt.s32.totalorder %s42_s28, %s42_s28 }
  0x1a   :  { %p452_p10 = scmp.ne.s32.totalorder %s42_s28, %s451_s29  ;;  %p457_p12 = scmp.lt.s32.totalorder %s451_s29, %s451_s29 }
  0x1c   :  { %p458_p13 = por %p457_p12, %p456_p11 }
  0x1e   :  { %p459_p0 = pnand %p458_p13, %p452_p10 }
  0x20   :  { %462 = shalt.err (!%p459_p0)
}
  0x21   :  { %s494_s1 = smov 128   ;;  %s495_s30 = smov 8  }
  0x22   :  { %47 = dma.hbm_to_vmem [thread:$0]  %s547_s2, 512, %s42_s28, [#allocation6], %s494_s1, %s494_s1, %s495_s30  }
  0x23   :  { %483 = dma.done.wait [#allocation3], 96  }
  0x24   :  { %484 = vsyncadd [#allocation3], 4294967200 }
  0x25   :  { %485 = dma.done.wait [#allocation6], 608  }
  0x26   :  { %486 = vsyncadd [#allocation6], 4294966688  ;;  %v496_v0 = vmov 0.0   ;;  %vm497_vm0 = vmmov 0   ;;  %v63_v1 = vld [vmem:[#allocation7 + $0x18] sm:$0xff]  ;;  %v62_v2 = vld [vmem:[#allocation7 + $0x10] sm:$0xff] }
  0x27   :  { %358 = vmatprep.subr.mxu0 %v496_v0  ;;  %369 = vmatprep.subr.mxu1 %v496_v0  ;;  %v61_v3 = vld [vmem:[#allocation7 + $0x8] sm:$0xff]  ;;  %v60_v4 = vld [vmem:[#allocation7] sm:$0xff]  ;;  %v64_v5 = vld [vmem:[#allocation5] sm:$0x3]  ;;  %vm65_vm1 = vcmask 261120   ;;  %vm312_vm4 = vcmask 1041408  }
  0x28   :  { %366 = vmatprep.mubr.msk.f32.mxu0 %vm497_vm0, %v496_v0  ;;  %377 = vmatprep.mubr.msk.f32.mxu1 %vm497_vm0, %v496_v0  ;;  %v140_v6 = vld [vmem:[#allocation5 + $0x2] sm:$0x3]  ;;  %v215_v7 = vld [vmem:[#allocation5 + $0x4] sm:$0x3]  ;;  %v289_v9 = vld [vmem:[#allocation2] sm:$0x3] }
  0x29   :  { %359 = vmatpush3.msra.mxu0 %v63_v1  ;;  %370 = vmatpush3.msra.mxu1 %v63_v1  ;;  %v292_v10 = vld [vmem:[#allocation2 + $0x2] sm:$0x3]  ;;  %v295_v16 = vld [vmem:[#allocation2 + $0x4] sm:$0x3]  ;;  %v309_v28 = vld [vmem:[%s548_s3] sm:$0x3] }
  0x2a   :  { %360 = vmatprep.subr.mxu0 %v496_v0  ;;  %371 = vmatprep.subr.mxu1 %v496_v0  ;;  %s498_s7 = smov [#allocation8]  }
  0x2b   :  { %361 = vmatpush3.msra.mxu0 %v62_v2  ;;  %372 = vmatpush3.msra.mxu1 %v62_v2  ;;  %s330_s8 = sshll.u32 %s498_s7, 4  ;;  %s331_s8 = int_to_ptr.vmem [resolvable:$true] %s330_s8 }
  0x2c   :  { %362 = vmatprep.subr.mxu0 %v496_v0  ;;  %373 = vmatprep.subr.mxu1 %v496_v0  ;;  %s463_s9 = scalar_lea.vmem %s331_s8, 16  ;;  %s467_s3 = scalar_lea.vmem %s331_s8, 32 }
  0x2d   :  { %363 = vmatpush3.msra.mxu0 %v61_v3  ;;  %374 = vmatpush3.msra.mxu1 %v61_v3  ;;  %p464_p1 = scmp.ne.s32.totalorder %s331_s8, %s463_s9  ;;  %p468_p2 = scmp.lt.s32.totalorder %s331_s8, %s331_s8 }
  0x2e   :  { %364 = vmatprep.subr.mxu0 %v496_v0  ;;  %375 = vmatprep.subr.mxu1 %v496_v0  ;;  %p469_p3 = scmp.lt.s32.totalorder %s467_s3, %s463_s9 }
  0x2f   :  { %365 = vmatpush3.msra.mxu0 %v60_v4  ;;  %376 = vmatpush3.msra.mxu1 %v60_v4 }
  0x30   :  { %367 = vmatmul.mubr.msk.f32.vlgmr.msra.gmra.mxu0 %vm65_vm1, %v64_v5  ;;  %380 = vmatprep.subr.mxu0 %v496_v0  ;;  %p470_p4 = por %p469_p3, %p468_p2 }
  0x31   :  { %378 = vmatmul.mubr.msk.f32.vlgmr.msra.gmra.mxu1 %vm65_vm1, %v140_v6  ;;  %381 = vmatpush3.msra.mxu0 %v63_v1 }
  0x32   :  { %382 = vmatprep.subr.mxu0 %v496_v0  ;;  %388 = vmatprep.mubr.msk.f32.mxu0 %vm497_vm0, %v496_v0  ;;  %p471_p5 = pnand %p470_p4, %p464_p1 }
  0x33   :  { %383 = vmatpush3.msra.mxu0 %v62_v2 }
  0x34   :  { %384 = vmatprep.subr.mxu0 %v496_v0 }
  0x35   :  { %385 = vmatpush3.msra.mxu0 %v61_v3 }
  0x36   :  { %386 = vmatprep.subr.mxu0 %v496_v0 }
  0x37   :  { %387 = vmatpush3.msra.mxu0 %v60_v4 }
  0x38   :  { %389 = vmatmul.mubr.msk.f32.vlgmr.msra.gmra.mxu0 %vm65_vm1, %v215_v7 }
  0xf0   :  { %v135_v8 = vpop.f32.mrf.mxu0 }
  0xf1   :  { %v210_v11 = vpop.f32.mrf.mxu1  ;;  %v290_v13 = vsub.f32 %v289_v9, %v135_v8 }
  0xf2   :  { %v368_v12 = vpop.f32.mrf.mxu0  ;;  %v293_v14 = vsub.f32 %v292_v10, %v210_v11 }
  0xf3   :  { %v379_v15 = vpop.f32.mrf.mxu1  ;;  %v297_v17 = vmul.f32 %v290_v13, %v290_v13 }
  0xf4   :  { %v298_v18 = vmul.f32 %v293_v14, %v293_v14 }
  0xf6   :  { %v299_v22 = vadd.f32 %v298_v18, %v297_v17 }
  0xf8   :  { %v285_v19 = vpop.f32.mrf.mxu0 }
  0xf9   :  { %v296_v20 = vsub.f32 %v295_v16, %v285_v19 }
  0xfa   :  { %v390_v21 = vpop.f32.mrf.mxu0 }
  0xfb   :  { %v300_v23 = vmul.f32 %v296_v20, %v296_v20 }
  0xfd   :  { %v301_v24 = vadd.f32 %v300_v23, %v299_v22 }
  0xff   :  { %401 = vrsqrt.f32 %v301_v24  ;;  %vm304_vm2 = vcmp.eq.f32.partialorder %v301_v24, inf  ;;  %v307_v27 = vand.u32 2147483648, %v301_v24  ;;  %vm306_vm3 = vcmp.eq.f32.partialorder %v301_v24, 0.0 }
 0x10c   :  { %v402_v25 = vpop.eup %401 }
 0x10d   :  { %v303_v26 = vmul.f32 %v402_v25, %v301_v24 }
 0x10f   :  { %v305_v29 = vsel %vm304_vm2, %v301_v24, %v303_v26 }
 0x110   :  { %v308_v30 = vsel %vm306_vm3, %v307_v27, %v305_v29 }
 0x111   :  { %v310_v31 = vsub.f32 %v308_v30, %v309_v28 }
 0x113   :  { %v311_v32 = vmul.f32 %v310_v31, %v310_v31 }
 0x115   :  { %v313_v33 = vsel %vm312_vm4, %v311_v32, 0.0 }
 0x116   :  { %v314_v34 = vrot.slane %v313_v33, 4 }
 0x118   :  { %v315_v35 = vadd.f32 %v314_v34, %v313_v33 }
 0x11a   :  { %v316_v36 = vrot.slane %v315_v35, 2 }
 0x11c   :  { %v317_v37 = vadd.f32 %v316_v36, %v315_v35 }
 0x11e   :  { %v318_v38 = vrot.slane %v317_v37, 1 }
 0x120   :  { %v319_v39 = vadd.f32 %v318_v38, %v317_v37 }
 0x122   :  { %320 = vst [vmem:[#allocation8] sm:$0x1] %v319_v39 }
 0x123   :  { %474 = shalt.err (!%p471_p5)
}
 0x124   :  { %333 = dma.vmem_to_hbm [thread:$0]  %s331_s8, 16, %s549_s4, [#allocation4]  }
 0x125   :  { %487 = dma.done.wait [#allocation4], 16  }
 0x126   :  { %488 = vsyncadd [#allocation4], 4294967280 }
 0x127   :  { %337 = vsyncpa [#allocation3], 1 }
 0x128   :  { %338 = vsyncpa [#allocation6], 1 }
 0x129   :  { %339 = vsyncpa [#allocation4], 1 }

</bundles_post_ra>
